<compile_context>
chip_gen: v7x
topology: tpu7x:2x2x1
jax: 0.10.0
libtpu: 0.0.40
codegen_flags: <defaults>
</compile_context>

<pallas_src>
import functools
from math import floor

import jax
import jax.numpy as jnp
from jax.experimental import pallas as pl
from jax.experimental.pallas import tpu as pltpu

BN_EPS = 1e-5
LEAKY_SLOPE = 0.01  # nn.LeakyReLU default negative_slope


# ---------------------------------------------------------------------------
# Fused layer kernel: conv (3 packed-K MXU matmuls) -> batch-stat BN -> LeakyReLU
# ---------------------------------------------------------------------------
def _fused_layer_kernel(x_ref, w_ref, g_ref, b_ref, o_ref,
                        *, N, OH, OW, CIN, COUT):
    # x_ref : (N, (OH+1)*OW, 6*CIN) bf16  channel-packed tap planes
    #         channels [0, 3C)  = row-parity-0 planes, kw = 0,1,2
    #         channels [3C, 6C) = row-parity-1 planes, kw = 0,1,2
    # w_ref : (3, 3*CIN, COUT)      bf16  one packed slab per kernel row kh
    # g_ref : (1, COUT) f32  BN gamma
    # b_ref : (1, COUT) f32  BN beta
    # o_ref : (N, OH*OW, COUT) bf16  layer output
    OHW = OH * OW
    C3 = 3 * CIN
    M = N * OHW

    # Conv taps for kernel row kh live at row offset (kh//2)*OW of the parity
    # (kh%2) channel block -> three (N*OHW, 3*CIN) operands, f32 accumulation.
    x0 = x_ref[:, 0:OHW, 0:C3].reshape(M, C3)            # kh = 0
    x1 = x_ref[:, 0:OHW, C3:2 * C3].reshape(M, C3)       # kh = 1
    # kh = 2: one-row shift inside the parity-0 planes.  For layer 2, OW=4 is
    # not a multiple of 8 sublanes -> a tiny relayout copy; negligible here.
    x2 = x_ref[:, OW:OW + OHW, 0:C3].reshape(M, C3)      # kh = 2

    acc = jnp.dot(x0, w_ref[0], preferred_element_type=jnp.float32)
    acc = acc + jnp.dot(x1, w_ref[1], preferred_element_type=jnp.float32)
    acc = acc + jnp.dot(x2, w_ref[2], preferred_element_type=jnp.float32)
    # acc: (N*OHW, COUT) f32 pre-BN conv output (whole batch, resident in VMEM)

    # BatchNorm with batch statistics (training-mode forward), mean-centred
    # variance for numerical robustness; biased variance as in PyTorch BN.
    inv_m = 1.0 / float(M)
    mean = jnp.sum(acc, axis=0, keepdims=True) * inv_m            # (1, COUT)
    cent = acc - mean
    var = jnp.sum(cent * cent, axis=0, keepdims=True) * inv_m     # (1, COUT)
    scale = g_ref[...] * jax.lax.rsqrt(var + BN_EPS)              # (1, COUT)
    y = cent * scale + b_ref[...]

    # LeakyReLU(0.01)
    y = jnp.where(y >= 0.0, y, LEAKY_SLOPE * y)

    o_ref[...] = y.reshape(N, OHW, COUT).astype(o_ref.dtype)


def _fused_layer(x_taps, w_packed, gamma, beta, OH, OW):
    N, HPOW, C6 = x_taps.shape
    CIN = C6 // 6
    COUT = w_packed.shape[-1]
    OHW = OH * OW

    kernel = functools.partial(_fused_layer_kernel,
                               N=N, OH=OH, OW=OW, CIN=CIN, COUT=COUT)

    flops = 2 * N * OHW * 9 * CIN * COUT + 8 * N * OHW * COUT
    bytes_acc = (x_taps.size * 2 + w_packed.size * 2
                 + (gamma.size + beta.size) * 4 + N * OHW * COUT * 2)

    return pl.pallas_call(
        kernel,
        out_shape=jax.ShapeDtypeStruct((N, OHW, COUT), jnp.bfloat16),
        grid=(1,),
        in_specs=[
            pl.BlockSpec((N, HPOW, C6), lambda i: (0, 0, 0)),
            pl.BlockSpec((3, 3 * CIN, COUT), lambda i: (0, 0, 0)),
            pl.BlockSpec((1, COUT), lambda i: (0, 0)),
            pl.BlockSpec((1, COUT), lambda i: (0, 0)),
        ],
        out_specs=pl.BlockSpec((N, OHW, COUT), lambda i: (0, 0, 0)),
        compiler_params=pltpu.CompilerParams(
            dimension_semantics=("arbitrary",)),
        cost_estimate=pl.CostEstimate(flops=flops, transcendentals=COUT,
                                      bytes_accessed=bytes_acc),
    )(x_taps, w_packed, gamma, beta)


# ---------------------------------------------------------------------------
# Wrapper-side channel-packed tap-plane construction (k=3, s=2, p=1).
# Plane (rh, kw) = x_pad[:, rh::2, kw::2, :] clipped to (OH+1, OW); the 6
# planes are concatenated along the channel axis so every conv tap (kh, kw)
# is a contiguous row range of a contiguous 3*Cin channel block in-kernel.
# Data blowup is ~1.5x of the activation (vs ~2.25x for stride-2 im2col).
# ---------------------------------------------------------------------------
def _build_tap_planes(x_nhwc, OH, OW):
    N, H, W, C = x_nhwc.shape
    HP = OH + 1
    PH, PW = 2 * OH + 2, 2 * OW + 2
    xp = jnp.pad(x_nhwc, ((0, 0), (1, PH - H - 1), (1, PW - W - 1), (0, 0)))
    planes = []
    for rh in (0, 1):                       # row parity
        for kw in range(3):                 # kernel column
            p = jax.lax.slice(xp, (0, rh, kw, 0),
                              (N, rh + 2 * HP - 1, kw + 2 * OW - 1, C),
                              (1, 2, 2, 1))            # (N, HP, OW, C)
            planes.append(p)
    packed = jnp.concatenate(planes, axis=-1)           # (N, HP, OW, 6C)
    return packed.reshape(N, HP * OW, 6 * C)            # bf16 in, bf16 out


class EncoderPallas:
    """Pallas port of hotel_id_nns Encoder (stack of Conv+BN+LeakyReLU layers)."""

    def __init__(self, in_size, in_channels, hidden_channels,
                 stride=2, padding=1, kernel_size=3, key=None):
        assert stride == 2 and padding == 1 and kernel_size == 3, \
            "Pallas port is specialized to the Encoder defaults (k=3, s=2, p=1)."
        if key is None:
            key = jax.random.PRNGKey(0)
        channels = [in_channels] + list(hidden_channels)

        out_size = in_size
        for _ in range(len(hidden_channels)):
            out_size = floor((out_size - kernel_size + 2 * padding) / stride + 1)
        self.out_size = out_size

        self.params = []
        for i in range(len(channels) - 1):
            c_in, c_out = channels[i], channels[i + 1]
            key, kw_key = jax.random.split(key)
            fan_in = c_in * kernel_size * kernel_size
            w = jax.random.normal(kw_key, (c_out, c_in, kernel_size, kernel_size),
                                  jnp.float32) / jnp.sqrt(fan_in)
            # (Cout,Cin,KH,KW) -> (KH,KW,Cin,Cout) -> (3, 3*Cin, Cout):
            # per-kh packed slab, K-index = kw*Cin + ci (matches tap packing).
            w_packed = jnp.transpose(w, (2, 3, 1, 0)).reshape(3, 3 * c_in, c_out)
            w_packed = w_packed.astype(jnp.bfloat16)
            gamma = jnp.ones((1, c_out), jnp.float32)   # BatchNorm2d default weight
            beta = jnp.zeros((1, c_out), jnp.float32)   # BatchNorm2d default bias
            # NOTE: Conv2d bias intentionally dropped — a per-channel constant
            # cancels exactly under the following training-mode BatchNorm.
            self.params.append((w_packed, gamma, beta))

    @functools.partial(jax.jit, static_argnums=0)
    def __call__(self, x_nchw):
        # accepts NCHW (PyTorch layout), computes in NHWC bf16, returns NCHW f32.
        x = jnp.transpose(x_nchw, (0, 2, 3, 1)).astype(jnp.bfloat16)
        for (w_packed, gamma, beta) in self.params:
            N, H, W, _ = x.shape
            c_out = w_packed.shape[-1]
            OH = (H - 1) // 2 + 1
            OW = (W - 1) // 2 + 1
            x_taps = _build_tap_planes(x, OH, OW)               # (N, (OH+1)*OW, 6*Cin) bf16
            y = _fused_layer(x_taps, w_packed, gamma, beta, OH, OW)   # fused Pallas layer
            x = y.reshape(N, OH, OW, c_out)
        return jnp.transpose(x, (0, 3, 1, 2)).astype(jnp.float32)   # NHWC -> NCHW, f32


if __name__ == "__main__":
    # small shapes consistent with the module
    batch, in_channels, in_size = 2, 4, 16
    hidden_channels = [8, 16]

    enc = EncoderPallas(in_size=in_size, in_channels=in_channels,
                        hidden_channels=hidden_channels,
                        key=jax.random.PRNGKey(0))

    x = jax.random.normal(jax.random.PRNGKey(0),
                          (batch, in_channels, in_size, in_size), jnp.float32)

    out = jax.block_until_ready(enc(x))

    expected = (batch, hidden_channels[-1], enc.out_size, enc.out_size)
    assert out.shape == expected, (out.shape, expected)
    assert bool(jnp.all(jnp.isfinite(out)))
    print("KERNEL_OK")
</pallas_src>

<mosaic_0001>
module attributes {stable_mosaic.version = 11 : i64} {
  func.func @_fused_layer_kernel(%arg0: i32, %arg1: memref<2x72x24xbf16, #tpu.memory_space<vmem>>, %arg2: memref<3x12x8xbf16, #tpu.memory_space<vmem>>, %arg3: memref<1x8xf32, #tpu.memory_space<vmem>>, %arg4: memref<1x8xf32, #tpu.memory_space<vmem>>, %arg5: memref<2x64x8xbf16, #tpu.memory_space<vmem>>) attributes {dimension_semantics = [#tpu.dimension_semantics<arbitrary>], iteration_bounds = array<i64: 1>, scalar_prefetch = 0 : i64, scratch_operands = 0 : i64, tpu.core_type = #tpu.core_type<tc>, window_params = [{pipeline_mode = #tpu.pipeline_mode<synchronous>, transform_indices = @transform_0, window_bounds = array<i64: 2, 72, 24>}, {pipeline_mode = #tpu.pipeline_mode<synchronous>, transform_indices = @transform_1, window_bounds = array<i64: 3, 12, 8>}, {pipeline_mode = #tpu.pipeline_mode<synchronous>, transform_indices = @transform_2, window_bounds = array<i64: 1, 8>}, {pipeline_mode = #tpu.pipeline_mode<synchronous>, transform_indices = @transform_3, window_bounds = array<i64: 1, 8>}, {pipeline_mode = #tpu.pipeline_mode<synchronous>, transform_indices = @transform_4, window_bounds = array<i64: 2, 64, 8>}]} {
    %c0 = arith.constant 0 : index
    %c0_0 = arith.constant 0 : index
    %c0_1 = arith.constant 0 : index
    %0 = vector.load %arg1[%c0, %c0_0, %c0_1] : memref<2x72x24xbf16, #tpu.memory_space<vmem>>, vector<2x64x12xbf16>
    %1 = vector.shape_cast %0 : vector<2x64x12xbf16> to vector<128x12xbf16>
    %c0_2 = arith.constant 0 : index
    %c0_3 = arith.constant 0 : index
    %c12 = arith.constant 12 : index
    %2 = vector.load %arg1[%c0_2, %c0_3, %c12] : memref<2x72x24xbf16, #tpu.memory_space<vmem>>, vector<2x64x12xbf16>
    %3 = vector.shape_cast %2 : vector<2x64x12xbf16> to vector<128x12xbf16>
    %c0_4 = arith.constant 0 : index
    %c8 = arith.constant 8 : index
    %c0_5 = arith.constant 0 : index
    %4 = vector.load %arg1[%c0_4, %c8, %c0_5] : memref<2x72x24xbf16, #tpu.memory_space<vmem>>, vector<2x64x12xbf16>
    %5 = vector.shape_cast %4 : vector<2x64x12xbf16> to vector<128x12xbf16>
    %c0_6 = arith.constant 0 : index
    %c0_7 = arith.constant 0 : index
    %c0_8 = arith.constant 0 : index
    %6 = vector.load %arg2[%c0_6, %c0_7, %c0_8] : memref<3x12x8xbf16, #tpu.memory_space<vmem>>, vector<1x12x8xbf16>
    %7 = vector.shape_cast %6 : vector<1x12x8xbf16> to vector<12x8xbf16>
    %cst = arith.constant dense<0.000000e+00> : vector<128x8xf32>
    %8 = tpu.matmul %1, %7, %cst {dimension_numbers = #tpu.dot_dimension_numbers<[1], [0], [0], [1], [0, 0, 1, 1], [], []>} : vector<128x12xbf16>, vector<12x8xbf16>, vector<128x8xf32> -> vector<128x8xf32>
    %c1 = arith.constant 1 : index
    %c0_9 = arith.constant 0 : index
    %c0_10 = arith.constant 0 : index
    %9 = vector.load %arg2[%c1, %c0_9, %c0_10] : memref<3x12x8xbf16, #tpu.memory_space<vmem>>, vector<1x12x8xbf16>
    %10 = vector.shape_cast %9 : vector<1x12x8xbf16> to vector<12x8xbf16>
    %cst_11 = arith.constant dense<0.000000e+00> : vector<128x8xf32>
    %11 = tpu.matmul %3, %10, %cst_11 {dimension_numbers = #tpu.dot_dimension_numbers<[1], [0], [0], [1], [0, 0, 1, 1], [], []>} : vector<128x12xbf16>, vector<12x8xbf16>, vector<128x8xf32> -> vector<128x8xf32>
    %12 = arith.addf %8, %11 : vector<128x8xf32>
    %c2 = arith.constant 2 : index
    %c0_12 = arith.constant 0 : index
    %c0_13 = arith.constant 0 : index
    %13 = vector.load %arg2[%c2, %c0_12, %c0_13] : memref<3x12x8xbf16, #tpu.memory_space<vmem>>, vector<1x12x8xbf16>
    %14 = vector.shape_cast %13 : vector<1x12x8xbf16> to vector<12x8xbf16>
    %cst_14 = arith.constant dense<0.000000e+00> : vector<128x8xf32>
    %15 = tpu.matmul %5, %14, %cst_14 {dimension_numbers = #tpu.dot_dimension_numbers<[1], [0], [0], [1], [0, 0, 1, 1], [], []>} : vector<128x12xbf16>, vector<12x8xbf16>, vector<128x8xf32> -> vector<128x8xf32>
    %16 = arith.addf %12, %15 : vector<128x8xf32>
    %cst_15 = arith.constant dense<0.000000e+00> : vector<8xf32>
    %17 = vector.multi_reduction <add>, %16, %cst_15 [0] : vector<128x8xf32> to vector<8xf32>
    %18 = vector.shape_cast %17 : vector<8xf32> to vector<1x8xf32>
    %cst_16 = arith.constant 7.812500e-03 : f32
    %19 = vector.broadcast %cst_16 : f32 to vector<1x8xf32>
    %20 = arith.mulf %18, %19 : vector<1x8xf32>
    %21 = vector.broadcast %20 : vector<1x8xf32> to vector<128x8xf32>
    %22 = arith.subf %16, %21 : vector<128x8xf32>
    %23 = arith.mulf %22, %22 : vector<128x8xf32>
    %cst_17 = arith.constant dense<0.000000e+00> : vector<8xf32>
    %24 = vector.multi_reduction <add>, %23, %cst_17 [0] : vector<128x8xf32> to vector<8xf32>
    %25 = vector.shape_cast %24 : vector<8xf32> to vector<1x8xf32>
    %cst_18 = arith.constant 7.812500e-03 : f32
    %26 = vector.broadcast %cst_18 : f32 to vector<1x8xf32>
    %27 = arith.mulf %25, %26 : vector<1x8xf32>
    %c0_19 = arith.constant 0 : index
    %c0_20 = arith.constant 0 : index
    %28 = vector.load %arg3[%c0_19, %c0_20] : memref<1x8xf32, #tpu.memory_space<vmem>>, vector<1x8xf32>
    %cst_21 = arith.constant 9.99999974E-6 : f32
    %29 = vector.broadcast %cst_21 : f32 to vector<1x8xf32>
    %30 = arith.addf %27, %29 : vector<1x8xf32>
    %31 = math.rsqrt %30 : vector<1x8xf32>
    %32 = arith.mulf %28, %31 : vector<1x8xf32>
    %33 = vector.broadcast %32 : vector<1x8xf32> to vector<128x8xf32>
    %34 = arith.mulf %22, %33 : vector<128x8xf32>
    %c0_22 = arith.constant 0 : index
    %c0_23 = arith.constant 0 : index
    %35 = vector.load %arg4[%c0_22, %c0_23] : memref<1x8xf32, #tpu.memory_space<vmem>>, vector<1x8xf32>
    %36 = vector.broadcast %35 : vector<1x8xf32> to vector<128x8xf32>
    %37 = arith.addf %34, %36 : vector<128x8xf32>
    %cst_24 = arith.constant 0.000000e+00 : f32
    %38 = vector.broadcast %cst_24 : f32 to vector<128x8xf32>
    %39 = arith.cmpf oge, %37, %38 : vector<128x8xf32>
    %cst_25 = arith.constant 0.00999999977 : f32
    %40 = vector.broadcast %cst_25 : f32 to vector<128x8xf32>
    %41 = arith.mulf %40, %37 : vector<128x8xf32>
    %42 = arith.select %39, %37, %41 : vector<128x8xi1>, vector<128x8xf32>
    %43 = vector.shape_cast %42 : vector<128x8xf32> to vector<2x64x8xf32>
    %44 = arith.truncf %43 : vector<2x64x8xf32> to vector<2x64x8xbf16>
    %c0_26 = arith.constant 0 : index
    %c0_27 = arith.constant 0 : index
    %c0_28 = arith.constant 0 : index
    %45 = vector.load %arg5[%c0_26, %c0_27, %c0_28] : memref<2x64x8xbf16, #tpu.memory_space<vmem>>, vector<2x64x8xbf16>
    tpu.vector_store %arg5[%c0_26, %c0_27, %c0_28], %44 {strides = array<i32>} : memref<2x64x8xbf16, #tpu.memory_space<vmem>>, vector<2x64x8xbf16>,
    return
  }
  func.func @transform_0(%arg0: i32) -> (i32, i32, i32) {
    %c0_i32 = arith.constant 0 : i32
    %c0_i32_0 = arith.constant 0 : i32
    %c0_i32_1 = arith.constant 0 : i32
    %c0_i32_2 = arith.constant 0 : i32
    return %c0_i32, %c0_i32_0, %c0_i32_1 : i32, i32, i32
  }
  func.func @transform_1(%arg0: i32) -> (i32, i32, i32) {
    %c0_i32 = arith.constant 0 : i32
    %c0_i32_0 = arith.constant 0 : i32
    %c0_i32_1 = arith.constant 0 : i32
    %c0_i32_2 = arith.constant 0 : i32
    return %c0_i32, %c0_i32_0, %c0_i32_1 : i32, i32, i32
  }
  func.func @transform_2(%arg0: i32) -> (i32, i32) {
    %c0_i32 = arith.constant 0 : i32
    %c0_i32_0 = arith.constant 0 : i32
    %c0_i32_1 = arith.constant 0 : i32
    return %c0_i32, %c0_i32_0 : i32, i32
  }
  func.func @transform_3(%arg0: i32) -> (i32, i32) {
    %c0_i32 = arith.constant 0 : i32
    %c0_i32_0 = arith.constant 0 : i32
    %c0_i32_1 = arith.constant 0 : i32
    return %c0_i32, %c0_i32_0 : i32, i32
  }
  func.func @transform_4(%arg0: i32) -> (i32, i32, i32) {
    %c0_i32 = arith.constant 0 : i32
    %c0_i32_0 = arith.constant 0 : i32
    %c0_i32_1 = arith.constant 0 : i32
    %c0_i32_2 = arith.constant 0 : i32
    return %c0_i32, %c0_i32_0, %c0_i32_1 : i32, i32, i32
  }
}

module attributes {stable_mosaic.version = 11 : i64} {
  func.func @_fused_layer_kernel(%arg0: i32, %arg1: memref<2x20x48xbf16, #tpu.memory_space<vmem>>, %arg2: memref<3x24x16xbf16, #tpu.memory_space<vmem>>, %arg3: memref<1x16xf32, #tpu.memory_space<vmem>>, %arg4: memref<1x16xf32, #tpu.memory_space<vmem>>, %arg5: memref<2x16x16xbf16, #tpu.memory_space<vmem>>) attributes {dimension_semantics = [#tpu.dimension_semantics<arbitrary>], iteration_bounds = array<i64: 1>, scalar_prefetch = 0 : i64, scratch_operands = 0 : i64, tpu.core_type = #tpu.core_type<tc>, window_params = [{pipeline_mode = #tpu.pipeline_mode<synchronous>, transform_indices = @transform_0, window_bounds = array<i64: 2, 20, 48>}, {pipeline_mode = #tpu.pipeline_mode<synchronous>, transform_indices = @transform_1, window_bounds = array<i64: 3, 24, 16>}, {pipeline_mode = #tpu.pipeline_mode<synchronous>, transform_indices = @transform_2, window_bounds = array<i64: 1, 16>}, {pipeline_mode = #tpu.pipeline_mode<synchronous>, transform_indices = @transform_3, window_bounds = array<i64: 1, 16>}, {pipeline_mode = #tpu.pipeline_mode<synchronous>, transform_indices = @transform_4, window_bounds = array<i64: 2, 16, 16>}]} {
    %c0 = arith.constant 0 : index
    %c0_0 = arith.constant 0 : index
    %c0_1 = arith.constant 0 : index
    %0 = vector.load %arg1[%c0, %c0_0, %c0_1] : memref<2x20x48xbf16, #tpu.memory_space<vmem>>, vector<2x16x24xbf16>
    %1 = vector.shape_cast %0 : vector<2x16x24xbf16> to vector<32x24xbf16>
    %c0_2 = arith.constant 0 : index
    %c0_3 = arith.constant 0 : index
    %c24 = arith.constant 24 : index
    %2 = vector.load %arg1[%c0_2, %c0_3, %c24] : memref<2x20x48xbf16, #tpu.memory_space<vmem>>, vector<2x16x24xbf16>
    %3 = vector.shape_cast %2 : vector<2x16x24xbf16> to vector<32x24xbf16>
    %c0_4 = arith.constant 0 : index
    %c4 = arith.constant 4 : index
    %c0_5 = arith.constant 0 : index
    %4 = vector.load %arg1[%c0_4, %c4, %c0_5] : memref<2x20x48xbf16, #tpu.memory_space<vmem>>, vector<2x16x24xbf16>
    %5 = vector.shape_cast %4 : vector<2x16x24xbf16> to vector<32x24xbf16>
    %c0_6 = arith.constant 0 : index
    %c0_7 = arith.constant 0 : index
    %c0_8 = arith.constant 0 : index
    %6 = vector.load %arg2[%c0_6, %c0_7, %c0_8] : memref<3x24x16xbf16, #tpu.memory_space<vmem>>, vector<1x24x16xbf16>
    %7 = vector.shape_cast %6 : vector<1x24x16xbf16> to vector<24x16xbf16>
    %cst = arith.constant dense<0.000000e+00> : vector<32x16xf32>
    %8 = tpu.matmul %1, %7, %cst {dimension_numbers = #tpu.dot_dimension_numbers<[1], [0], [0], [1], [0, 0, 1, 1], [], []>} : vector<32x24xbf16>, vector<24x16xbf16>, vector<32x16xf32> -> vector<32x16xf32>
    %c1 = arith.constant 1 : index
    %c0_9 = arith.constant 0 : index
    %c0_10 = arith.constant 0 : index
    %9 = vector.load %arg2[%c1, %c0_9, %c0_10] : memref<3x24x16xbf16, #tpu.memory_space<vmem>>, vector<1x24x16xbf16>
    %10 = vector.shape_cast %9 : vector<1x24x16xbf16> to vector<24x16xbf16>
    %cst_11 = arith.constant dense<0.000000e+00> : vector<32x16xf32>
    %11 = tpu.matmul %3, %10, %cst_11 {dimension_numbers = #tpu.dot_dimension_numbers<[1], [0], [0], [1], [0, 0, 1, 1], [], []>} : vector<32x24xbf16>, vector<24x16xbf16>, vector<32x16xf32> -> vector<32x16xf32>
    %12 = arith.addf %8, %11 : vector<32x16xf32>
    %c2 = arith.constant 2 : index
    %c0_12 = arith.constant 0 : index
    %c0_13 = arith.constant 0 : index
    %13 = vector.load %arg2[%c2, %c0_12, %c0_13] : memref<3x24x16xbf16, #tpu.memory_space<vmem>>, vector<1x24x16xbf16>
    %14 = vector.shape_cast %13 : vector<1x24x16xbf16> to vector<24x16xbf16>
    %cst_14 = arith.constant dense<0.000000e+00> : vector<32x16xf32>
    %15 = tpu.matmul %5, %14, %cst_14 {dimension_numbers = #tpu.dot_dimension_numbers<[1], [0], [0], [1], [0, 0, 1, 1], [], []>} : vector<32x24xbf16>, vector<24x16xbf16>, vector<32x16xf32> -> vector<32x16xf32>
    %16 = arith.addf %12, %15 : vector<32x16xf32>
    %cst_15 = arith.constant dense<0.000000e+00> : vector<16xf32>
    %17 = vector.multi_reduction <add>, %16, %cst_15 [0] : vector<32x16xf32> to vector<16xf32>
    %18 = vector.shape_cast %17 : vector<16xf32> to vector<1x16xf32>
    %cst_16 = arith.constant 3.125000e-02 : f32
    %19 = vector.broadcast %cst_16 : f32 to vector<1x16xf32>
    %20 = arith.mulf %18, %19 : vector<1x16xf32>
    %21 = vector.broadcast %20 : vector<1x16xf32> to vector<32x16xf32>
    %22 = arith.subf %16, %21 : vector<32x16xf32>
    %23 = arith.mulf %22, %22 : vector<32x16xf32>
    %cst_17 = arith.constant dense<0.000000e+00> : vector<16xf32>
    %24 = vector.multi_reduction <add>, %23, %cst_17 [0] : vector<32x16xf32> to vector<16xf32>
    %25 = vector.shape_cast %24 : vector<16xf32> to vector<1x16xf32>
    %cst_18 = arith.constant 3.125000e-02 : f32
    %26 = vector.broadcast %cst_18 : f32 to vector<1x16xf32>
    %27 = arith.mulf %25, %26 : vector<1x16xf32>
    %c0_19 = arith.constant 0 : index
    %c0_20 = arith.constant 0 : index
    %28 = vector.load %arg3[%c0_19, %c0_20] : memref<1x16xf32, #tpu.memory_space<vmem>>, vector<1x16xf32>
    %cst_21 = arith.constant 9.99999974E-6 : f32
    %29 = vector.broadcast %cst_21 : f32 to vector<1x16xf32>
    %30 = arith.addf %27, %29 : vector<1x16xf32>
    %31 = math.rsqrt %30 : vector<1x16xf32>
    %32 = arith.mulf %28, %31 : vector<1x16xf32>
    %33 = vector.broadcast %32 : vector<1x16xf32> to vector<32x16xf32>
    %34 = arith.mulf %22, %33 : vector<32x16xf32>
    %c0_22 = arith.constant 0 : index
    %c0_23 = arith.constant 0 : index
    %35 = vector.load %arg4[%c0_22, %c0_23] : memref<1x16xf32, #tpu.memory_space<vmem>>, vector<1x16xf32>
    %36 = vector.broadcast %35 : vector<1x16xf32> to vector<32x16xf32>
    %37 = arith.addf %34, %36 : vector<32x16xf32>
    %cst_24 = arith.constant 0.000000e+00 : f32
    %38 = vector.broadcast %cst_24 : f32 to vector<32x16xf32>
    %39 = arith.cmpf oge, %37, %38 : vector<32x16xf32>
    %cst_25 = arith.constant 0.00999999977 : f32
    %40 = vector.broadcast %cst_25 : f32 to vector<32x16xf32>
    %41 = arith.mulf %40, %37 : vector<32x16xf32>
    %42 = arith.select %39, %37, %41 : vector<32x16xi1>, vector<32x16xf32>
    %43 = vector.shape_cast %42 : vector<32x16xf32> to vector<2x16x16xf32>
    %44 = arith.truncf %43 : vector<2x16x16xf32> to vector<2x16x16xbf16>
    %c0_26 = arith.constant 0 : index
    %c0_27 = arith.constant 0 : index
    %c0_28 = arith.constant 0 : index
    %45 = vector.load %arg5[%c0_26, %c0_27, %c0_28] : memref<2x16x16xbf16, #tpu.memory_space<vmem>>, vector<2x16x16xbf16>
    tpu.vector_store %arg5[%c0_26, %c0_27, %c0_28], %44 {strides = array<i32>} : memref<2x16x16xbf16, #tpu.memory_space<vmem>>, vector<2x16x16xbf16>,
    return
  }
  func.func @transform_0(%arg0: i32) -> (i32, i32, i32) {
    %c0_i32 = arith.constant 0 : i32
    %c0_i32_0 = arith.constant 0 : i32
    %c0_i32_1 = arith.constant 0 : i32
    %c0_i32_2 = arith.constant 0 : i32
    return %c0_i32, %c0_i32_0, %c0_i32_1 : i32, i32, i32
  }
  func.func @transform_1(%arg0: i32) -> (i32, i32, i32) {
    %c0_i32 = arith.constant 0 : i32
    %c0_i32_0 = arith.constant 0 : i32
    %c0_i32_1 = arith.constant 0 : i32
    %c0_i32_2 = arith.constant 0 : i32
    return %c0_i32, %c0_i32_0, %c0_i32_1 : i32, i32, i32
  }
  func.func @transform_2(%arg0: i32) -> (i32, i32) {
    %c0_i32 = arith.constant 0 : i32
    %c0_i32_0 = arith.constant 0 : i32
    %c0_i32_1 = arith.constant 0 : i32
    return %c0_i32, %c0_i32_0 : i32, i32
  }
  func.func @transform_3(%arg0: i32) -> (i32, i32) {
    %c0_i32 = arith.constant 0 : i32
    %c0_i32_0 = arith.constant 0 : i32
    %c0_i32_1 = arith.constant 0 : i32
    return %c0_i32, %c0_i32_0 : i32, i32
  }
  func.func @transform_4(%arg0: i32) -> (i32, i32, i32) {
    %c0_i32 = arith.constant 0 : i32
    %c0_i32_0 = arith.constant 0 : i32
    %c0_i32_1 = arith.constant 0 : i32
    %c0_i32_2 = arith.constant 0 : i32
    return %c0_i32, %c0_i32_0, %c0_i32_1 : i32, i32, i32
  }
}

</mosaic_0001>

<bundles_post_ra>
// kernel: a_call__.3
= control target key start
LH: loop header
LB: loop body
LE: loop exit
PB: predicated region body
PF: predicated region fallthrough
CT: control target
= control target key end

     0   :  { %vm32_vm0 = vcmask 1041408   ;;  %vm33_vm1 = vcmask 1045508   ;;  %vm77_vm2 = vcmask 195584   ;;  %s475_s27 = smov 104   ;;  %vm84_vm4 = vcmask 1043456   ;;  %s593_s0 = inlined_call_operand.vmem [shape: bf16[2,20,48], index: 0, kind: input, shape index: {}]   ;;  %s594_s1 = inlined_call_operand.vmem [shape: bf16[3,24,16], index: 1, kind: input, shape index: {}]   ;;  %s595_s2 = inlined_call_operand.vmem [shape: f32[1,16], index: 2, kind: input, shape index: {}]   ;;  %s596_s3 = inlined_call_operand.vmem [shape: f32[1,16], index: 3, kind: input, shape index: {}]   ;;  %s597_s4 = inlined_call_operand.vmem [shape: bf16[2,16,16], index: 4, kind: output, shape index: {}]  }
   0x1   :  { %v18_v0 = vld [vmem:[%s593_s0] sm:$0xf]  ;;  %v19_v1 = vld [vmem:[%s593_s0 + $0x4] sm:$0xf]  ;;  %v20_v5 = vld [vmem:[%s593_s0 + $0xc] sm:$0xf] }
   0x2   :  { %v22_v2 = vld [vmem:[%s593_s0] sm:$0xc]  ;;  %v37_v3 = vrot.slane %v19_v1, 6  ;;  %v389_v4 = vcombine.low %v18_v0, %v19_v1  ;;  %v21_v6 = vld [vmem:[%s593_s0 + $0x10] sm:$0xf]  ;;  %vm519_vm3 = vmor %vm32_vm0, %vm33_vm1  ;;  %vm285_vm5 = vcmask 130048  }
   0x3   :  { %v467_v7 = vld [vmem:[%s594_s1] sm:$0xff]   ;;  %v384_v9 = vrot.slane %v22_v2, 10  ;;  %v390_v10 = vcombine.low %v20_v5, %v21_v6  ;;  %v471_v12 = vld [vmem:[%s594_s1 + $0xc] sm:$0xff]   ;;  %v468_v13 = vld [vmem:[%s594_s1 + $0x8] ss:$0 sps:$4 sm:$0xff]   ;;  %v44_v21 = vrot.slane %v21_v6, 6 }
   0x4   :  { %64 = vrot.lane.b32.xlu0 %v389_v4, %s475_s27  ;;  %441 = vmatprep.mubr.msk.bf16.mxu0 %vm77_vm2, %v389_v4  ;;  %v39_v11 = vrot.slane %v37_v3, 4  ;;  %v469_v14 = vld [vmem:[%s594_s1 + $0x18] sm:$0xff]   ;;  %v23_v15 = vld [vmem:[%s593_s0 + $0x8] sm:$0x3]  ;;  %v153_v17 = vsel %vm84_vm4, %v468_v13, 0  ;;  %vm375_vm10 = vcmask 125952  }
   0x5   :  { %437 = vmatprep.subr.bf16.mxu0 %v467_v7  ;;  %429 = vmatprep.subr.bf16.mxu1 %v471_v12  ;;  %v38_v16 = vsel %vm519_vm3, %v384_v9, %v37_v3  ;;  %v40_v18 = vrot.slane %v23_v15, 6  ;;  %v472_v19 = vld [vmem:[%s594_s1 + $0x14] ss:$0 sps:$4 sm:$0xff]   ;;  %v24_v20 = vld [vmem:[%s593_s0 + $0xc] sm:$0xc]  ;;  %v46_v28 = vrot.slane %v44_v21, 4 }
   0x6   :  { %438 = vmatpush3.bf16.msra.mxu0 %v467_v7  ;;  %430 = vmatpush3.bf16.msra.mxu1 %v471_v12  ;;  %v25_v23 = vld [vmem:[%s593_s0 + $0x14] sm:$0x3]  ;;  %v470_v24 = vld [vmem:[%s594_s1 + $0x20] ss:$0 sps:$4 sm:$0xff]   ;;  %v86_v26 = vsel %vm84_vm4, %v472_v19, 0  ;;  %v385_v27 = vrot.slane %v24_v20, 10 }
   0x7   :  { %462 = vmatprep.subr.msk.bf16.mxu0 %vm84_vm4, %v468_v13  ;;  %v41_v22 = vsel %vm519_vm3, %v39_v11, %v40_v18  ;;  %461 = vmatprep.subr.msk.bf16.mxu1 %vm84_vm4, %v472_v19  ;;  %v47_v29 = vrot.slane %v25_v23, 6  ;;  %v230_v30 = vsel %vm84_vm4, %v470_v24, 0  ;;  %v322_v23 = vld [vmem:[%s595_s2] sm:$0x1] }
   0x8   :  { %66 = vrot.lane.b32.xlu0 %v390_v10, %s475_s27  ;;  %v402_v25 = vcombine.low %v38_v16, %v41_v22  ;;  %v45_v31 = vsel %vm519_vm3, %v385_v27, %v44_v21  ;;  %v327_v21 = vlaneseq }
   0x9   :  { %v48_v32 = vsel %vm519_vm3, %v46_v28, %v47_v29  ;;  %v408_v28 = vld [vmem:[%s596_s3] ss:$0 sm:$0xff] }
   0xa   :  { %440 = vmatpush3.bf16.msra.mxu0 %v153_v17  ;;  %432 = vmatpush3.bf16.msra.mxu1 %v86_v26  ;;  %v403_v33 = vcombine.low %v45_v31, %v48_v32  ;;  %v328_v22 = vshrl.u32 %v327_v21, 7 }
   0xb   :  { %445 = vmatprep.subr.bf16.mxu0 %v469_v14 }
   0xd   :  { %442 = vmatmul.mubr.msk.bf16.vlgmr.msra.gmra.mrb[0].mxu0 %vm77_vm2, %v390_v10 }
   0xe   :  { %446 = vmatpush3.bf16.msra.mxu0 %v469_v14  ;;  %449 = vmatprep.mubr.msk.bf16.mxu0 %vm77_vm2, %v402_v25 }
   0xf   :  { %463 = vmatprep.subr.msk.bf16.mxu0 %vm84_vm4, %v470_v24  ;;  %v329_v24 = vsub.s32 0, %v328_v22 }
  0x12   :  { %448 = vmatpush3.bf16.msra.mxu0 %v230_v30 }
  0x19   :  { %450 = vmatmul.mubr.msk.bf16.vlgmr.msra.gmra.mrb[0].mxu0 %vm77_vm2, %v403_v33 }
  0x76   :  { %v65_v34 = vpop.permute.xlu0 %64 }
  0x77   :  { %433 = vmatprep.mubr.msk.bf16.mxu1 %vm77_vm2, %v65_v34 }
  0x7a   :  { %v67_v35 = vpop.permute.xlu0 %66 }
  0x7b   :  { %434 = vmatmul.mubr.msk.bf16.vlgmr.msra.gmra.mrb[0].mxu1 %vm77_vm2, %v67_v35 }
  0xec   :  { %v451_v36 = vpop.f32.mrb[0].mxu0 }
  0xed   :  { %v266_v37 = vpop.f32.mrb[1].mxu0 }
  0xee   :  { %v452_v38 = vpop.f32.mrb[2].mxu0 }
  0xef   :  { %v269_v39 = vpop.f32.mrb[3].mxu0 }
 0x14e   :  { %v435_v40 = vpop.f32.mrb[0].mxu1 }
 0x14f   :  { %v453_v41 = vadd.f32 %v451_v36, %v435_v40  ;;  %v122_v42 = vpop.f32.mrb[1].mxu1 }
 0x150   :  { %v454_v43 = vadd.f32 %v266_v37, %v122_v42  ;;  %v436_v44 = vpop.f32.mrb[2].mxu1 }
 0x151   :  { %v455_v45 = vadd.f32 %v452_v38, %v436_v44  ;;  %v125_v46 = vpop.f32.mrb[3].mxu1  ;;  %v289_v51 = vsel %vm285_vm5, %v453_v41, 0.0 }
 0x152   :  { %v456_v47 = vadd.f32 %v269_v39, %v125_v46  ;;  %v286_v48 = vsel %vm285_vm5, %v454_v43, 0.0 }
 0x153   :  { %v291_v53 = vsel %vm285_vm5, %v455_v45, 0.0 }
 0x154   :  { %v287_v49 = vsel %vm285_vm5, %v456_v47, 0.0 }
 0x155   :  { %v288_v50 = vadd.f32 %v287_v49, %v286_v48 }
 0x157   :  { %v290_v52 = vadd.f32 %v289_v51, %v288_v50 }
 0x159   :  { %v292_v54 = vadd.f32 %v291_v53, %v290_v52 }
 0x15b   :  { %v293_v55 = vrot.slane %v292_v54, 4 }
 0x15d   :  { %v294_v56 = vadd.f32 %v293_v55, %v292_v54 }
 0x15f   :  { %v295_v57 = vrot.slane %v294_v56, 2 }
 0x161   :  { %v296_v58 = vadd.f32 %v295_v57, %v294_v56 }
 0x163   :  { %v297_v59 = vrot.slane %v296_v58, 1 }
 0x165   :  { %v298_v60 = vadd.f32 %v297_v59, %v296_v58 }
 0x167   :  { %v299_v61 = vmul.f32 0.03125, %v298_v60 }
 0x169   :  { %v300_v62 = vsub.f32 %v454_v43, %v299_v61  ;;  %v301_v63 = vsub.f32 %v456_v47, %v299_v61  ;;  %v302_v0 = vsub.f32 %v453_v41, %v299_v61  ;;  %v303_v1 = vsub.f32 %v455_v45, %v299_v61 }
 0x16b   :  { %v304_v2 = vmul.f32 %v300_v62, %v300_v62  ;;  %v305_v3 = vmul.f32 %v301_v63, %v301_v63  ;;  %v306_v4 = vmul.f32 %v302_v0, %v302_v0  ;;  %v307_v5 = vmul.f32 %v303_v1, %v303_v1 }
 0x16d   :  { %v308_v6 = vsel %vm285_vm5, %v304_v2, 0.0  ;;  %v309_v7 = vsel %vm285_vm5, %v305_v3, 0.0  ;;  %v311_v9 = vsel %vm285_vm5, %v306_v4, 0.0  ;;  %v313_v11 = vsel %vm285_vm5, %v307_v5, 0.0 }
 0x16e   :  { %v310_v8 = vadd.f32 %v309_v7, %v308_v6 }
 0x170   :  { %v312_v10 = vadd.f32 %v311_v9, %v310_v8 }
 0x172   :  { %v314_v12 = vadd.f32 %v313_v11, %v312_v10 }
 0x174   :  { %v315_v13 = vrot.slane %v314_v12, 4 }
 0x176   :  { %v316_v14 = vadd.f32 %v315_v13, %v314_v12 }
 0x178   :  { %v317_v15 = vrot.slane %v316_v14, 2 }
 0x17a   :  { %v318_v16 = vadd.f32 %v317_v15, %v316_v14 }
 0x17c   :  { %v319_v17 = vrot.slane %v318_v16, 1 }
 0x17e   :  { %v320_v18 = vadd.f32 %v319_v17, %v318_v16 }
 0x180   :  { %v321_v19 = vmul.f32 0.03125, %v320_v18 }
 0x182   :  { %v323_v20 = vadd.f32 1e-05, %v321_v19 }
 0x184   :  { %473 = vrsqrt.f32 %v323_v20 }
 0x18e   :  { %v474_v25 = vpop.eup %473 }
 0x18f   :  { %v325_v26 = vmul.f32 %v474_v25, %v322_v23 }
 0x191   :  { %v330_v27 = vrot.slane %v325_v26, %v329_v24 }
 0x193   :  { %v332_v29 = vmul.f32 %v330_v27, %v300_v62  ;;  %v333_v30 = vmul.f32 %v330_v27, %v301_v63  ;;  %v334_v31 = vmul.f32 %v330_v27, %v302_v0  ;;  %v335_v32 = vmul.f32 %v330_v27, %v303_v1 }
 0x195   :  { %v343_v33 = vadd.f32 %v408_v28, %v332_v29  ;;  %v344_v34 = vadd.f32 %v408_v28, %v333_v30  ;;  %v345_v35 = vadd.f32 %v408_v28, %v334_v31  ;;  %v346_v36 = vadd.f32 %v408_v28, %v335_v32 }
 0x197   :  { %vm347_vm6 = vcmp.ge.f32.partialorder %v343_v33, 0.0  ;;  %vm348_vm7 = vcmp.ge.f32.partialorder %v344_v34, 0.0  ;;  %vm349_vm8 = vcmp.ge.f32.partialorder %v345_v35, 0.0  ;;  %vm350_vm9 = vcmp.ge.f32.partialorder %v346_v36, 0.0 }
 0x198   :  { %v351_v37 = vmul.f32 0.01, %v343_v33  ;;  %v352_v38 = vmul.f32 0.01, %v344_v34  ;;  %v353_v39 = vmul.f32 0.01, %v345_v35 }
 0x199   :  { %v354_v40 = vmul.f32 0.01, %v346_v36 }
 0x19a   :  { %v355_v41 = vsel %vm347_vm6, %v343_v33, %v351_v37  ;;  %v356_v42 = vsel %vm348_vm7, %v344_v34, %v352_v38  ;;  %v357_v43 = vsel %vm349_vm8, %v345_v35, %v353_v39 }
 0x19b   :  { %v358_v44 = vsel %vm350_vm9, %v346_v36, %v354_v40  ;;  %v413_v45 = vpack.c.bf16 %v355_v41, %v355_v41  ;;  %v414_v46 = vpack.c.bf16 %v356_v42, %v356_v42  ;;  %v415_v47 = vpack.c.bf16 %v357_v43, %v357_v43 }
 0x19c   :  { %v416_v48 = vpack.c.bf16 %v358_v44, %v358_v44 }
 0x19d   :  { %376 = vst.msk [vmem:[%s597_s4] sm:$0xf] %vm375_vm10, %v413_v45  ;;  %377 = vst.msk [vmem:[%s597_s4 + $0x4] sm:$0xf] %vm375_vm10, %v414_v46 }
 0x19e   :  { %378 = vst.msk [vmem:[%s597_s4 + $0x8] sm:$0xf] %vm375_vm10, %v415_v47  ;;  %379 = vst.msk [vmem:[%s597_s4 + $0xc] sm:$0xf] %vm375_vm10, %v416_v48 }

// kernel: a_call__.2
= control target key start
LH: loop header
LB: loop body
LE: loop exit
PB: predicated region body
PF: predicated region fallthrough
CT: control target
= control target key end

     0   :  { %vm102_vm0 = vcmask 97280   ;;  %s1029_s5 = smov 116   ;;  %vm127_vm1 = vcmask 1045504   ;;  %vm517_vm2 = vcmask 64512   ;;  %s1371_s0 = inlined_call_operand.vmem [shape: bf16[2,72,24], index: 0, kind: input, shape index: {}]   ;;  %s1372_s1 = inlined_call_operand.vmem [shape: bf16[3,12,8], index: 1, kind: input, shape index: {}]   ;;  %s1373_s2 = inlined_call_operand.vmem [shape: f32[1,8], index: 2, kind: input, shape index: {}]   ;;  %s1374_s3 = inlined_call_operand.vmem [shape: f32[1,8], index: 3, kind: input, shape index: {}]   ;;  %s1375_s4 = inlined_call_operand.vmem [shape: bf16[2,64,8], index: 4, kind: output, shape index: {}]  }
   0x1   :  { %v18_v0 = vld [vmem:[%s1371_s0] sm:$0xf]  ;;  %v19_v1 = vld [vmem:[%s1371_s0 + $0x4] sm:$0xf]  ;;  %v20_v2 = vld [vmem:[%s1371_s0 + $0x8] sm:$0xf] }
   0x2   :  { %v810_v3 = vcombine.low %v18_v0, %v19_v1  ;;  %v21_v4 = vld [vmem:[%s1371_s0 + $0xc] sm:$0xf]  ;;  %v22_v5 = vld [vmem:[%s1371_s0 + $0x10] sm:$0xf]  ;;  %v23_v6 = vld [vmem:[%s1371_s0 + $0x14] sm:$0xf]  ;;  %v838_v30 = vcombine.low %v19_v1, %v20_v2 }
   0x3   :  { %v24_v7 = vld [vmem:[%s1371_s0 + $0x18] sm:$0xf]  ;;  %v812_v8 = vcombine.low %v22_v5, %v23_v6  ;;  %v25_v9 = vld [vmem:[%s1371_s0 + $0x1c] sm:$0xf]  ;;  %v811_v10 = vcombine.low %v20_v2, %v21_v4  ;;  %v26_v12 = vld [vmem:[%s1371_s0 + $0x24] sm:$0xf]  ;;  %v839_v31 = vcombine.low %v21_v4, %v22_v5 }
   0x4   :  { %81 = vrot.lane.b32.xlu0 %v810_v3, %s1029_s5  ;;  %935 = vmatprep.mubr.msk.bf16.mxu0 %vm102_vm0, %v810_v3  ;;  %v813_v11 = vcombine.low %v24_v7, %v25_v9  ;;  %v27_v13 = vld [vmem:[%s1371_s0 + $0x28] sm:$0xf]  ;;  %v28_v14 = vld [vmem:[%s1371_s0 + $0x2c] sm:$0xf]  ;;  %v29_v15 = vld [vmem:[%s1371_s0 + $0x30] sm:$0xf]  ;;  %v840_v32 = vcombine.low %v23_v6, %v24_v7 }
   0x5   :  { %85 = vrot.lane.b32.xlu1 %v812_v8, %s1029_s5  ;;  %v30_v16 = vld [vmem:[%s1371_s0 + $0x34] sm:$0xf]  ;;  %v31_v17 = vld [vmem:[%s1371_s0 + $0x38] sm:$0xf]  ;;  %v1024_v18 = vld [vmem:[%s1372_s1] sm:$0x3f]   ;;  %v814_v19 = vcombine.low %v26_v12, %v27_v13  ;;  %v815_v21 = vcombine.low %v28_v14, %v29_v15  ;;  %v842_v35 = vcombine.low %v27_v13, %v28_v14 }
   0x6   :  { %v1025_v20 = vld [vmem:[%s1372_s1 + $0x10] sm:$0x3f]   ;;  %1004 = vmatprep.subr.msk.bf16.mxu0 %vm127_vm1, %v1024_v18  ;;  %v258_v22 = vsel %vm127_vm1, %v1024_v18, 0  ;;  %v32_v23 = vld [vmem:[%s1371_s0 + $0x3c] sm:$0xf]  ;;  %v816_v27 = vcombine.low %v30_v16, %v31_v17  ;;  %v843_v36 = vcombine.low %v29_v15, %v30_v16 }
   0x7   :  { %v33_v24 = vld [vmem:[%s1371_s0 + $0x40] sm:$0xf]  ;;  %934 = vmatpush3.bf16.msra.mxu0 %v258_v22  ;;  %v1026_v25 = vld [vmem:[%s1372_s1 + $0x8] sm:$0x3f]   ;;  %v402_v26 = vsel %vm127_vm1, %v1025_v20, 0  ;;  %v844_v37 = vcombine.low %v31_v17, %v32_v23 }
   0x8   :  { %83 = vrot.lane.b32.xlu0 %v811_v10, %s1029_s5  ;;  %1006 = vmatprep.subr.msk.bf16.mxu0 %vm127_vm1, %v1025_v20  ;;  %v129_v28 = vsel %vm127_vm1, %v1026_v25, 0  ;;  %v817_v29 = vcombine.low %v32_v23, %v33_v24  ;;  %v34_v33 = vld [vmem:[%s1371_s0 + $0x20] sm:$0xf]  ;;  %v35_v38 = vld [vmem:[%s1371_s0 + $0x44] sm:$0xf] }
   0x9   :  { %87 = vrot.lane.b32.xlu1 %v813_v11, %s1029_s5  ;;  %1003 = vmatprep.subr.msk.bf16.mxu1 %vm127_vm1, %v1026_v25  ;;  %v841_v34 = vcombine.low %v25_v9, %v34_v33  ;;  %v845_v39 = vcombine.low %v33_v24, %v35_v38 }
   0xa   :  { %936 = vmatmul.mubr.msk.bf16.vlgmr.msra.gmra.mrb[0].mxu0 %vm102_vm0, %v811_v10  ;;  %916 = vmatpush3.bf16.msra.mxu1 %v129_v28 }
   0xb   :  { %939 = vmatprep.mubr.msk.bf16.mxu0 %vm102_vm0, %v812_v8  ;;  %952 = vmatpush3.bf16.msra.mxu0 %v402_v26 }
   0xc   :  { %89 = vrot.lane.b32.xlu0 %v814_v19, %s1029_s5  ;;  %1005 = vmatprep.subr.msk.bf16.mxu1 %vm127_vm1, %v1024_v18 }
   0xd   :  { %91 = vrot.lane.b32.xlu1 %v815_v21, %s1029_s5 }
  0x10   :  { %93 = vrot.lane.b32.xlu0 %v816_v27, %s1029_s5 }
  0x11   :  { %95 = vrot.lane.b32.xlu1 %v817_v29, %s1029_s5 }
  0x12   :  { %940 = vmatmul.mubr.msk.bf16.gmra.mrb[4].mxu0 %vm102_vm0, %v813_v11 }
  0x13   :  { %953 = vmatprep.mubr.msk.bf16.mxu0 %vm102_vm0, %v838_v30 }
  0x1a   :  { %954 = vmatmul.mubr.msk.bf16.vlgmr.msra.gmra.mrb[0].mxu0 %vm102_vm0, %v839_v31 }
  0x1b   :  { %957 = vmatprep.mubr.msk.bf16.mxu0 %vm102_vm0, %v840_v32 }
  0x22   :  { %958 = vmatmul.mubr.msk.bf16.gmra.mrb[4].mxu0 %vm102_vm0, %v841_v34 }
  0x23   :  { %961 = vmatprep.mubr.msk.bf16.mxu0 %vm102_vm0, %v842_v35 }
  0x2a   :  { %962 = vmatmul.mubr.msk.bf16.gmra.mrb[8].mxu0 %vm102_vm0, %v843_v36 }
  0x2b   :  { %965 = vmatprep.mubr.msk.bf16.mxu0 %vm102_vm0, %v844_v37 }
  0x32   :  { %966 = vmatmul.mubr.msk.bf16.gmra.mrb[12].mxu0 %vm102_vm0, %v845_v39 }
  0x76   :  { %v82_v40 = vpop.permute.xlu0 %81 }
  0x77   :  { %917 = vmatprep.mubr.msk.bf16.mxu1 %vm102_vm0, %v82_v40  ;;  %v86_v41 = vpop.permute.xlu1 %85 }
  0x7a   :  { %v84_v42 = vpop.permute.xlu0 %83 }
  0x7b   :  { %918 = vmatmul.mubr.msk.bf16.vlgmr.msra.gmra.mrb[0].mxu1 %vm102_vm0, %v84_v42  ;;  %v88_v43 = vpop.permute.xlu1 %87 }
  0x7c   :  { %970 = vmatpush3.bf16.msra.mxu1 %v258_v22  ;;  %921 = vmatprep.mubr.msk.bf16.mxu1 %vm102_vm0, %v86_v41 }
  0x7e   :  { %v90_v44 = vpop.permute.xlu0 %89 }
  0x7f   :  { %v92_v45 = vpop.permute.xlu1 %91 }
  0x82   :  { %v94_v46 = vpop.permute.xlu0 %93 }
  0x83   :  { %922 = vmatmul.mubr.msk.bf16.gmra.mrb[4].mxu1 %vm102_vm0, %v88_v43  ;;  %v96_v47 = vpop.permute.xlu1 %95 }
  0x84   :  { %925 = vmatprep.mubr.msk.bf16.mxu1 %vm102_vm0, %v90_v44 }
  0x8b   :  { %926 = vmatmul.mubr.msk.bf16.gmra.mrb[8].mxu1 %vm102_vm0, %v92_v45 }
  0x8c   :  { %929 = vmatprep.mubr.msk.bf16.mxu1 %vm102_vm0, %v94_v46 }
  0x93   :  { %930 = vmatmul.mubr.msk.bf16.gmra.mrb[12].mxu1 %vm102_vm0, %v96_v47 }
  0x94   :  { %943 = vmatprep.mubr.msk.bf16.mxu1 %vm102_vm0, %v814_v19 }
  0x9b   :  { %944 = vmatmul.mubr.msk.bf16.vlgmr.msra.gmra.mrb[8].mxu1 %vm102_vm0, %v815_v21 }
  0x9c   :  { %947 = vmatprep.mubr.msk.bf16.mxu1 %vm102_vm0, %v816_v27 }
  0xa3   :  { %948 = vmatmul.mubr.msk.bf16.gmra.mrb[12].mxu1 %vm102_vm0, %v817_v29 }
  0xed   :  { %v955_v48 = vpop.f32.mrb[0].mxu0 }
  0xee   :  { %v438_v49 = vpop.f32.mrb[1].mxu0 }
  0xef   :  { %v956_v50 = vpop.f32.mrb[2].mxu0 }
  0xf0   :  { %v441_v51 = vpop.f32.mrb[3].mxu0 }
  0xf5   :  { %v959_v52 = vpop.f32.mrb[4].mxu0 }
  0xf6   :  { %v454_v53 = vpop.f32.mrb[5].mxu0 }
  0xf7   :  { %v960_v54 = vpop.f32.mrb[6].mxu0 }
  0xf8   :  { %v457_v55 = vpop.f32.mrb[7].mxu0 }
  0xfd   :  { %v963_v56 = vpop.f32.mrb[8].mxu0 }
  0xfe   :  { %v470_v57 = vpop.f32.mrb[9].mxu0 }
  0xff   :  { %v964_v58 = vpop.f32.mrb[10].mxu0 }
 0x100   :  { %v473_v59 = vpop.f32.mrb[11].mxu0 }
 0x105   :  { %v967_v60 = vpop.f32.mrb[12].mxu0 }
 0x106   :  { %v486_v61 = vpop.f32.mrb[13].mxu0 }
 0x107   :  { %v968_v62 = vpop.f32.mrb[14].mxu0 }
 0x108   :  { %v489_v63 = vpop.f32.mrb[15].mxu0 }
 0x14e   :  { %v919_v0 = vpop.f32.mrb[0].mxu1 }
 0x14f   :  { %v1157_v1 = vadd.f32 %v955_v48, %v919_v0  ;;  %v165_v2 = vpop.f32.mrb[1].mxu1 }
 0x150   :  { %v1159_v3 = vadd.f32 %v438_v49, %v165_v2  ;;  %v920_v4 = vpop.f32.mrb[2].mxu1 }
 0x151   :  { %v1161_v5 = vadd.f32 %v956_v50, %v920_v4  ;;  %v168_v6 = vpop.f32.mrb[3].mxu1  ;;  %v521_v11 = vsel %vm517_vm2, %v1157_v1, 0.0 }
 0x152   :  { %v1163_v7 = vadd.f32 %v441_v51, %v168_v6  ;;  %v518_v8 = vsel %vm517_vm2, %v1159_v3, 0.0 }
 0x153   :  { %v523_v16 = vsel %vm517_vm2, %v1161_v5, 0.0 }
 0x154   :  { %v519_v9 = vsel %vm517_vm2, %v1163_v7, 0.0 }
 0x155   :  { %v520_v10 = vadd.f32 %v519_v9, %v518_v8 }
 0x156   :  { %v923_v12 = vpop.f32.mrb[4].mxu1 }
 0x157   :  { %v522_v13 = vadd.f32 %v521_v11, %v520_v10  ;;  %v975_v14 = vadd.f32 %v959_v52, %v923_v12  ;;  %v181_v15 = vpop.f32.mrb[5].mxu1 }
 0x158   :  { %v976_v17 = vadd.f32 %v454_v53, %v181_v15  ;;  %v924_v18 = vpop.f32.mrb[6].mxu1 }
 0x159   :  { %v524_v19 = vadd.f32 %v523_v16, %v522_v13  ;;  %v977_v20 = vadd.f32 %v960_v54, %v924_v18  ;;  %v184_v21 = vpop.f32.mrb[7].mxu1  ;;  %v529_v27 = vsel %vm517_vm2, %v975_v14, 0.0 }
 0x15a   :  { %v525_v22 = vsel %vm517_vm2, %v976_v17, 0.0  ;;  %v978_v23 = vadd.f32 %v457_v55, %v184_v21 }
 0x15b   :  { %v526_v24 = vadd.f32 %v525_v22, %v524_v19  ;;  %v531_v29 = vsel %vm517_vm2, %v977_v20, 0.0 }
 0x15c   :  { %v527_v25 = vsel %vm517_vm2, %v978_v23, 0.0 }
 0x15d   :  { %v528_v26 = vadd.f32 %v527_v25, %v526_v24 }
 0x15f   :  { %v530_v28 = vadd.f32 %v529_v27, %v528_v26 }
 0x161   :  { %v532_v30 = vadd.f32 %v531_v29, %v530_v28 }
 0x16e   :  { %v945_v31 = vpop.f32.mrb[8].mxu1 }
 0x16f   :  { %v979_v32 = vadd.f32 %v963_v56, %v945_v31  ;;  %v326_v33 = vpop.f32.mrb[9].mxu1 }
 0x170   :  { %v980_v34 = vadd.f32 %v470_v57, %v326_v33  ;;  %v946_v35 = vpop.f32.mrb[10].mxu1 }
 0x171   :  { %v981_v36 = vadd.f32 %v964_v58, %v946_v35  ;;  %v329_v37 = vpop.f32.mrb[11].mxu1  ;;  %v537_v43 = vsel %vm517_vm2, %v979_v32, 0.0 }
 0x172   :  { %v533_v38 = vsel %vm517_vm2, %v980_v34, 0.0  ;;  %v982_v39 = vadd.f32 %v473_v59, %v329_v37 }
 0x173   :  { %v534_v40 = vadd.f32 %v533_v38, %v532_v30  ;;  %v539_v48 = vsel %vm517_vm2, %v981_v36, 0.0 }
 0x174   :  { %v535_v41 = vsel %vm517_vm2, %v982_v39, 0.0 }
 0x175   :  { %v536_v42 = vadd.f32 %v535_v41, %v534_v40 }
 0x176   :  { %v949_v44 = vpop.f32.mrb[12].mxu1 }
 0x177   :  { %v538_v45 = vadd.f32 %v537_v43, %v536_v42  ;;  %v983_v46 = vadd.f32 %v967_v60, %v949_v44  ;;  %v342_v47 = vpop.f32.mrb[13].mxu1 }
 0x178   :  { %v984_v49 = vadd.f32 %v486_v61, %v342_v47  ;;  %v950_v50 = vpop.f32.mrb[14].mxu1 }
 0x179   :  { %v540_v51 = vadd.f32 %v539_v48, %v538_v45  ;;  %v985_v52 = vadd.f32 %v968_v62, %v950_v50  ;;  %v345_v53 = vpop.f32.mrb[15].mxu1  ;;  %v545_v59 = vsel %vm517_vm2, %v983_v46, 0.0 }
 0x17a   :  { %v541_v54 = vsel %vm517_vm2, %v984_v49, 0.0  ;;  %v986_v55 = vadd.f32 %v489_v63, %v345_v53 }
 0x17b   :  { %v542_v56 = vadd.f32 %v541_v54, %v540_v51  ;;  %v547_v60 = vsel %vm517_vm2, %v985_v52, 0.0 }
 0x17c   :  { %v543_v57 = vsel %vm517_vm2, %v986_v55, 0.0 }
 0x17d   :  { %v544_v58 = vadd.f32 %v543_v57, %v542_v56 }
 0x17f   :  { %v546_v0 = vadd.f32 %v545_v59, %v544_v58 }
 0x181   :  { %v548_v2 = vadd.f32 %v547_v60, %v546_v0 }
 0x183   :  { %v549_v4 = vrot.slane %v548_v2, 4 }
 0x185   :  { %v550_v6 = vadd.f32 %v549_v4, %v548_v2 }
 0x187   :  { %v551_v61 = vrot.slane %v550_v6, 2 }
 0x189   :  { %v552_v8 = vadd.f32 %v551_v61, %v550_v6 }
 0x18b   :  { %v553_v9 = vrot.slane %v552_v8, 1 }
 0x18d   :  { %v554_v62 = vadd.f32 %v553_v9, %v552_v8 }
 0x18f   :  { %v555_v10 = vmul.f32 0.0078125, %v554_v62 }
 0x191   :  { %v1186_v11 = vsub.f32 %v1159_v3, %v555_v10  ;;  %v1189_v63 = vsub.f32 %v1163_v7, %v555_v10  ;;  %v1192_v12 = vsub.f32 %v1157_v1, %v555_v10  ;;  %v1195_v13 = vsub.f32 %v1161_v5, %v555_v10 }
 0x192   :  { %v1197_v15 = vsub.f32 %v976_v17, %v555_v10  ;;  %v1199_v16 = vsub.f32 %v978_v23, %v555_v10  ;;  %v1201_v18 = vsub.f32 %v975_v14, %v555_v10  ;;  %v1203_v19 = vsub.f32 %v977_v20, %v555_v10 }
 0x193   :  { %v1205_v21 = vsub.f32 %v980_v34, %v555_v10  ;;  %v1207_v3 = vsub.f32 %v982_v39, %v555_v10  ;;  %v1209_v7 = vsub.f32 %v979_v32, %v555_v10  ;;  %v1211_v22 = vsub.f32 %v981_v36, %v555_v10 }
 0x194   :  { %v1213_v1 = vsub.f32 %v984_v49, %v555_v10  ;;  %v1215_v5 = vsub.f32 %v986_v55, %v555_v10  ;;  %v1217_v17 = vsub.f32 %v983_v46, %v555_v10  ;;  %v1219_v23 = vsub.f32 %v985_v52, %v555_v10 }
 0x195   :  { %v572_v14 = vmul.f32 %v1186_v11, %v1186_v11  ;;  %v573_v20 = vmul.f32 %v1189_v63, %v1189_v63  ;;  %v574_v24 = vmul.f32 %v1192_v12, %v1192_v12  ;;  %v575_v25 = vmul.f32 %v1195_v13, %v1195_v13 }
 0x196   :  { %v576_v29 = vmul.f32 %v1197_v15, %v1197_v15  ;;  %v577_v32 = vmul.f32 %v1199_v16, %v1199_v16  ;;  %v578_v35 = vmul.f32 %v1201_v18, %v1201_v18  ;;  %v579_v38 = vmul.f32 %v1203_v19, %v1203_v19 }
 0x197   :  { %v588_v26 = vsel %vm517_vm2, %v572_v14, 0.0  ;;  %v589_v27 = vsel %vm517_vm2, %v573_v20, 0.0  ;;  %v591_v30 = vsel %vm517_vm2, %v574_v24, 0.0  ;;  %v593_v33 = vsel %vm517_vm2, %v575_v25, 0.0 }
 0x198   :  { %v590_v28 = vadd.f32 %v589_v27, %v588_v26  ;;  %v595_v36 = vsel %vm517_vm2, %v576_v29, 0.0  ;;  %v597_v39 = vsel %vm517_vm2, %v577_v32, 0.0  ;;  %v580_v41 = vmul.f32 %v1205_v21, %v1205_v21 }
 0x199   :  { %v599_v42 = vsel %vm517_vm2, %v578_v35, 0.0  ;;  %v581_v44 = vmul.f32 %v1207_v3, %v1207_v3  ;;  %v601_v45 = vsel %vm517_vm2, %v579_v38, 0.0  ;;  %v582_v47 = vmul.f32 %v1209_v7, %v1209_v7 }
 0x19a   :  { %v592_v31 = vadd.f32 %v591_v30, %v590_v28  ;;  %v603_v48 = vsel %vm517_vm2, %v580_v41, 0.0  ;;  %v583_v50 = vmul.f32 %v1211_v22, %v1211_v22  ;;  %v584_v53 = vmul.f32 %v1213_v1, %v1213_v1 }
 0x19b   :  { %v605_v51 = vsel %vm517_vm2, %v581_v44, 0.0  ;;  %v607_v54 = vsel %vm517_vm2, %v582_v47, 0.0  ;;  %v585_v56 = vmul.f32 %v1215_v5, %v1215_v5  ;;  %v586_v59 = vmul.f32 %v1217_v17, %v1217_v17  ;;  %v855_v44 = vld [vmem:[%s1374_s3] ss:$0 sm:$0xff] }
 0x19c   :  { %v594_v34 = vadd.f32 %v593_v33, %v592_v31  ;;  %v609_v57 = vsel %vm517_vm2, %v583_v50, 0.0  ;;  %v611_v0 = vsel %vm517_vm2, %v584_v53, 0.0  ;;  %v587_v2 = vmul.f32 %v1219_v23, %v1219_v23  ;;  %v626_v31 = vld [vmem:[%s1373_s2] sm:$0x1] }
 0x19d   :  { %v613_v4 = vsel %vm517_vm2, %v585_v56, 0.0  ;;  %v615_v61 = vsel %vm517_vm2, %v586_v59, 0.0  ;;  %v631_v29 = vlaneseq }
 0x19e   :  { %v596_v37 = vadd.f32 %v595_v36, %v594_v34  ;;  %v617_v9 = vsel %vm517_vm2, %v587_v2, 0.0 }
 0x19f   :  { %v632_v30 = vshrl.u32 %v631_v29, 7 }
 0x1a0   :  { %v598_v40 = vadd.f32 %v597_v39, %v596_v37 }
 0x1a1   :  { %v633_v32 = vsub.s32 0, %v632_v30 }
 0x1a2   :  { %v600_v43 = vadd.f32 %v599_v42, %v598_v40 }
 0x1a4   :  { %v602_v46 = vadd.f32 %v601_v45, %v600_v43 }
 0x1a6   :  { %v604_v49 = vadd.f32 %v603_v48, %v602_v46 }
 0x1a8   :  { %v606_v52 = vadd.f32 %v605_v51, %v604_v49 }
 0x1aa   :  { %v608_v55 = vadd.f32 %v607_v54, %v606_v52 }
 0x1ac   :  { %v610_v58 = vadd.f32 %v609_v57, %v608_v55 }
 0x1ae   :  { %v612_v60 = vadd.f32 %v611_v0, %v610_v58 }
 0x1b0   :  { %v614_v6 = vadd.f32 %v613_v4, %v612_v60 }
 0x1b2   :  { %v616_v8 = vadd.f32 %v615_v61, %v614_v6 }
 0x1b4   :  { %v618_v62 = vadd.f32 %v617_v9, %v616_v8 }
 0x1b6   :  { %v619_v10 = vrot.slane %v618_v62, 4 }
 0x1b8   :  { %v620_v14 = vadd.f32 %v619_v10, %v618_v62 }
 0x1ba   :  { %v621_v20 = vrot.slane %v620_v14, 2 }
 0x1bc   :  { %v622_v24 = vadd.f32 %v621_v20, %v620_v14 }
 0x1be   :  { %v623_v25 = vrot.slane %v622_v24, 1 }
 0x1c0   :  { %v624_v26 = vadd.f32 %v623_v25, %v622_v24 }
 0x1c2   :  { %v625_v27 = vmul.f32 0.0078125, %v624_v26 }
 0x1c4   :  { %v627_v28 = vadd.f32 1e-05, %v625_v27 }
 0x1c6   :  { %1027 = vrsqrt.f32 %v627_v28 }
 0x1d0   :  { %v1028_v33 = vpop.eup %1027 }
 0x1d1   :  { %v629_v34 = vmul.f32 %v1028_v33, %v626_v31 }
 0x1d3   :  { %v634_v35 = vrot.slane %v629_v34, %v633_v32 }
 0x1d5   :  { %v636_v36 = vmul.f32 %v634_v35, %v1186_v11  ;;  %v637_v37 = vmul.f32 %v634_v35, %v1189_v63  ;;  %v638_v38 = vmul.f32 %v634_v35, %v1192_v12  ;;  %v639_v39 = vmul.f32 %v634_v35, %v1195_v13 }
 0x1d6   :  { %v640_v40 = vmul.f32 %v634_v35, %v1197_v15  ;;  %v641_v41 = vmul.f32 %v634_v35, %v1199_v16  ;;  %v642_v42 = vmul.f32 %v634_v35, %v1201_v18  ;;  %v643_v43 = vmul.f32 %v634_v35, %v1203_v19 }
 0x1d7   :  { %v644_v11 = vmul.f32 %v634_v35, %v1205_v21  ;;  %v645_v63 = vmul.f32 %v634_v35, %v1207_v3  ;;  %v646_v12 = vmul.f32 %v634_v35, %v1209_v7  ;;  %v647_v13 = vmul.f32 %v634_v35, %v1211_v22 }
 0x1d8   :  { %v648_v15 = vmul.f32 %v634_v35, %v1213_v1  ;;  %v649_v16 = vmul.f32 %v634_v35, %v1215_v5  ;;  %v650_v18 = vmul.f32 %v634_v35, %v1217_v17  ;;  %v651_v19 = vmul.f32 %v634_v35, %v1219_v23 }
 0x1d9   :  { %v659_v45 = vadd.f32 %v855_v44, %v636_v36  ;;  %v660_v46 = vadd.f32 %v855_v44, %v637_v37  ;;  %v661_v47 = vadd.f32 %v855_v44, %v638_v38  ;;  %v662_v48 = vadd.f32 %v855_v44, %v639_v39 }
 0x1da   :  { %v663_v49 = vadd.f32 %v855_v44, %v640_v40  ;;  %v664_v21 = vadd.f32 %v855_v44, %v641_v41  ;;  %v665_v50 = vadd.f32 %v855_v44, %v642_v42  ;;  %v666_v3 = vadd.f32 %v855_v44, %v643_v43 }
 0x1db   :  { %v667_v51 = vadd.f32 %v855_v44, %v644_v11  ;;  %v668_v7 = vadd.f32 %v855_v44, %v645_v63  ;;  %v669_v52 = vadd.f32 %v855_v44, %v646_v12  ;;  %v670_v22 = vadd.f32 %v855_v44, %v647_v13 }
 0x1dc   :  { %v671_v53 = vadd.f32 %v855_v44, %v648_v15  ;;  %v672_v1 = vadd.f32 %v855_v44, %v649_v16  ;;  %v673_v54 = vadd.f32 %v855_v44, %v650_v18  ;;  %v674_v5 = vadd.f32 %v855_v44, %v651_v19 }
 0x1dd   :  { %vm676_vm4 = vcmp.ge.f32.partialorder %v660_v46, 0.0  ;;  %vm677_vm5 = vcmp.ge.f32.partialorder %v661_v47, 0.0  ;;  %vm678_vm6 = vcmp.ge.f32.partialorder %v662_v48, 0.0  ;;  %vm679_vm7 = vcmp.ge.f32.partialorder %v663_v49, 0.0 }
 0x1de   :  { %vm680_vm8 = vcmp.ge.f32.partialorder %v664_v21, 0.0  ;;  %vm682_vm10 = vcmp.ge.f32.partialorder %v666_v3, 0.0  ;;  %vm683_vm11 = vcmp.ge.f32.partialorder %v667_v51, 0.0  ;;  %vm684_vm12 = vcmp.ge.f32.partialorder %v668_v7, 0.0 }
 0x1df   :  { %vm685_vm13 = vcmp.ge.f32.partialorder %v669_v52, 0.0  ;;  %vm686_vm14 = vcmp.ge.f32.partialorder %v670_v22, 0.0  ;;  %vm687_vm15 = vcmp.ge.f32.partialorder %v671_v53, 0.0  ;;  %vm688_vm0 = vcmp.ge.f32.partialorder %v672_v1, 0.0 }
 0x1e0   :  { %vm689_vm1 = vcmp.ge.f32.partialorder %v673_v54, 0.0  ;;  %vm690_vm2 = vcmp.ge.f32.partialorder %v674_v5, 0.0  ;;  %v691_v17 = vmul.f32 0.01, %v659_v45  ;;  %v692_v23 = vmul.f32 0.01, %v660_v46 }
 0x1e1   :  { %v693_v55 = vmul.f32 0.01, %v661_v47  ;;  %v694_v56 = vmul.f32 0.01, %v662_v48  ;;  %v695_v57 = vmul.f32 0.01, %v663_v49 }
 0x1e2   :  { %v696_v58 = vmul.f32 0.01, %v664_v21  ;;  %v697_v59 = vmul.f32 0.01, %v665_v50  ;;  %v698_v0 = vmul.f32 0.01, %v666_v3  ;;  %v708_v8 = vsel %vm676_vm4, %v660_v46, %v692_v23 }
 0x1e3   :  { %v699_v60 = vmul.f32 0.01, %v667_v51  ;;  %vm1376_vm9 = vcmp.ge.f32.partialorder %v659_v45, 0.0  ;;  %v700_v4 = vmul.f32 0.01, %v668_v7  ;;  %v709_v14 = vsel %vm677_vm5, %v661_v47, %v693_v55 }
 0x1e4   :  { %v707_v2 = vsel %vm1376_vm9, %v659_v45, %v691_v17  ;;  %v701_v6 = vmul.f32 0.01, %v669_v52  ;;  %v702_v61 = vmul.f32 0.01, %v670_v22  ;;  %v703_v9 = vmul.f32 0.01, %v671_v53 }
 0x1e5   :  { %v704_v62 = vmul.f32 0.01, %v672_v1  ;;  %v705_v10 = vmul.f32 0.01, %v673_v54  ;;  %v706_v20 = vmul.f32 0.01, %v674_v5  ;;  %v710_v24 = vsel %vm678_vm6, %v662_v48, %v694_v56 }
 0x1e6   :  { %v711_v25 = vsel %vm679_vm7, %v663_v49, %v695_v57  ;;  %v712_v26 = vsel %vm680_vm8, %v664_v21, %v696_v58  ;;  %vm1377_vm3 = vcmp.ge.f32.partialorder %v665_v50, 0.0  ;;  %v714_v28 = vsel %vm682_vm10, %v666_v3, %v698_v0 }
 0x1e7   :  { %v713_v27 = vsel %vm1377_vm3, %v665_v50, %v697_v59  ;;  %v715_v29 = vsel %vm683_vm11, %v667_v51, %v699_v60  ;;  %v716_v30 = vsel %vm684_vm12, %v668_v7, %v700_v4  ;;  %v717_v31 = vsel %vm685_vm13, %v669_v52, %v701_v6 }
 0x1e8   :  { %v718_v32 = vsel %vm686_vm14, %v670_v22, %v702_v61  ;;  %v719_v33 = vsel %vm687_vm15, %v671_v53, %v703_v9  ;;  %v720_v34 = vsel %vm688_vm0, %v672_v1, %v704_v62  ;;  %v721_v35 = vsel %vm689_vm1, %v673_v54, %v705_v10 }
 0x1e9   :  { %v722_v36 = vsel %vm690_vm2, %v674_v5, %v706_v20  ;;  %v872_v37 = vpack.c.bf16 %v707_v2, %v707_v2  ;;  %v873_v38 = vpack.c.bf16 %v708_v8, %v708_v8  ;;  %v874_v39 = vpack.c.bf16 %v709_v14, %v709_v14 }
 0x1ea   :  { %v875_v40 = vpack.c.bf16 %v710_v24, %v710_v24  ;;  %v876_v41 = vpack.c.bf16 %v711_v25, %v711_v25  ;;  %v877_v42 = vpack.c.bf16 %v712_v26, %v712_v26  ;;  %v878_v43 = vpack.c.bf16 %v713_v27, %v713_v27 }
 0x1eb   :  { %v879_v44 = vpack.c.bf16 %v714_v28, %v714_v28  ;;  %v880_v11 = vpack.c.bf16 %v715_v29, %v715_v29  ;;  %v881_v63 = vpack.c.bf16 %v716_v30, %v716_v30  ;;  %vm1378_vm3 = vcmask 60416  }
 0x1ec   :  { %788 = vst.msk [vmem:[%s1375_s4] sm:$0xf] %vm1378_vm3, %v872_v37  ;;  %vm1379_vm4 = vmmov %vm1378_vm3  ;;  %v882_v12 = vpack.c.bf16 %v717_v31, %v717_v31  ;;  %v883_v13 = vpack.c.bf16 %v718_v32, %v718_v32  ;;  %v884_v15 = vpack.c.bf16 %v719_v33, %v719_v33  ;;  %v885_v16 = vpack.c.bf16 %v720_v34, %v720_v34 }
 0x1ed   :  { %789 = vst.msk [vmem:[%s1375_s4 + $0x4] sm:$0xf] %vm1379_vm4, %v873_v38  ;;  %vm1380_vm5 = vmmov %vm1378_vm3  ;;  %v886_v18 = vpack.c.bf16 %v721_v35, %v721_v35  ;;  %v887_v19 = vpack.c.bf16 %v722_v36, %v722_v36 }
 0x1ee   :  { %790 = vst.msk [vmem:[%s1375_s4 + $0x8] sm:$0xf] %vm1380_vm5, %v874_v39  ;;  %vm1381_vm6 = vmmov %vm1378_vm3 }
 0x1ef   :  { %791 = vst.msk [vmem:[%s1375_s4 + $0xc] sm:$0xf] %vm1381_vm6, %v875_v40  ;;  %vm1382_vm7 = vmmov %vm1378_vm3 }
 0x1f0   :  { %792 = vst.msk [vmem:[%s1375_s4 + $0x10] sm:$0xf] %vm1382_vm7, %v876_v41  ;;  %vm1383_vm8 = vmmov %vm1378_vm3 }
 0x1f1   :  { %793 = vst.msk [vmem:[%s1375_s4 + $0x14] sm:$0xf] %vm1383_vm8, %v877_v42  ;;  %vm1384_vm9 = vmmov %vm1378_vm3 }
 0x1f2   :  { %794 = vst.msk [vmem:[%s1375_s4 + $0x18] sm:$0xf] %vm1384_vm9, %v878_v43  ;;  %vm1385_vm10 = vmmov %vm1378_vm3 }
 0x1f3   :  { %795 = vst.msk [vmem:[%s1375_s4 + $0x1c] sm:$0xf] %vm1385_vm10, %v879_v44  ;;  %vm1386_vm11 = vmmov %vm1378_vm3 }
 0x1f4   :  { %796 = vst.msk [vmem:[%s1375_s4 + $0x20] sm:$0xf] %vm1386_vm11, %v880_v11  ;;  %vm1387_vm12 = vmmov %vm1378_vm3 }
 0x1f5   :  { %797 = vst.msk [vmem:[%s1375_s4 + $0x24] sm:$0xf] %vm1387_vm12, %v881_v63  ;;  %vm1388_vm13 = vmmov %vm1378_vm3 }
 0x1f6   :  { %798 = vst.msk [vmem:[%s1375_s4 + $0x28] sm:$0xf] %vm1388_vm13, %v882_v12  ;;  %vm1389_vm14 = vmmov %vm1378_vm3 }
 0x1f7   :  { %799 = vst.msk [vmem:[%s1375_s4 + $0x2c] sm:$0xf] %vm1389_vm14, %v883_v13  ;;  %vm1390_vm15 = vmmov %vm1378_vm3 }
 0x1f8   :  { %800 = vst.msk [vmem:[%s1375_s4 + $0x30] sm:$0xf] %vm1390_vm15, %v884_v15  ;;  %vm1391_vm0 = vmmov %vm1378_vm3 }
 0x1f9   :  { %801 = vst.msk [vmem:[%s1375_s4 + $0x34] sm:$0xf] %vm1391_vm0, %v885_v16  ;;  %vm1392_vm1 = vmmov %vm1391_vm0 }
 0x1fa   :  { %802 = vst.msk [vmem:[%s1375_s4 + $0x38] sm:$0xf] %vm1392_vm1, %v886_v18  ;;  %vm1393_vm2 = vmmov %vm1391_vm0 }
 0x1fb   :  { %803 = vst.msk [vmem:[%s1375_s4 + $0x3c] sm:$0xf] %vm1393_vm2, %v887_v19 }

</bundles_post_ra>
